<compile_context>
chip_gen: v7x
topology: tpu7x:2x2x1
jax: 0.10.0
libtpu: 0.0.40
codegen_flags: <defaults>
</compile_context>

<pallas_src>
import math

import jax
import jax.numpy as jnp
from jax import lax
from jax.experimental import pallas as pl
from jax.experimental.pallas import tpu as pltpu


# ----------------------------- Pallas kernel --------------------------------
def _sigmoid_f32(h):
    # sigmoid(h) == 0.5 * (tanh(0.5*h) + 1): one EUP op per element instead of
    # exp + divide.
    return 0.5 * (jnp.tanh(0.5 * h) + 1.0)


def _mlp_kernel(x_ref,
                w1_ref, b1_ref,
                w2_ref, b2_ref,
                w3_ref, b3_ref,
                w4_ref, b4_ref,
                w5_ref, b5_ref,
                out_ref):
    """Fused 5-layer MLP on one (batch_tile, n_in) input slab.

    Layers 1-3: MXU (bf16 in, f32 accumulation), activations as (out, tb).
    Layers 4-5: VPU rank-1 multiply-accumulate in f32 (K = 10 / 8 is pure MXU
    padding).  Output is (1, tb) f32, lane-dense.
    """
    tb = x_ref.shape[0]

    # ---- layer 1 (n_in -> 80), MXU: contract x's feature axis directly so the
    # wrapper never transposes / casts / re-writes x in HBM.
    xb = x_ref[...].astype(jnp.bfloat16)                      # (tb, n_in)
    h = lax.dot_general(w1_ref[...], xb, (((1,), (1,)), ((), ())),
                        preferred_element_type=jnp.float32)   # (80, tb)
    h = _sigmoid_f32(h + b1_ref[...]).astype(jnp.bfloat16)

    # ---- layer 2 (80 -> 40), MXU.
    h = jnp.dot(w2_ref[...], h, preferred_element_type=jnp.float32)
    h = _sigmoid_f32(h + b2_ref[...]).astype(jnp.bfloat16)    # (40, tb)

    # ---- layer 3 (40 -> 10), MXU.  Stay in f32: layers 4/5 run on the VPU.
    h = jnp.dot(w3_ref[...], h, preferred_element_type=jnp.float32)
    h = _sigmoid_f32(h + b3_ref[...])                         # (10, tb) f32

    # ---- layer 4 (10 -> 8), VPU: unrolled rank-1 broadcast-MACs over K=10.
    w4 = w4_ref[...]                                          # (8, 10) f32
    acc = w4[:, 0:1] * h[0:1, :] + b4_ref[...]                # (8, tb)
    for k in range(1, w4.shape[1]):
        acc = acc + w4[:, k:k + 1] * h[k:k + 1, :]
    h = _sigmoid_f32(acc)                                     # (8, tb) f32

    # ---- layer 5 (8 -> 1), VPU, linear.
    w5 = w5_ref[...]                                          # (1, 8) f32
    acc = w5[:, 0:1] * h[0:1, :] + b5_ref[...]                # (1, tb)
    for k in range(1, w5.shape[1]):
        acc = acc + w5[:, k:k + 1] * h[k:k + 1, :]

    out_ref[...] = acc.astype(out_ref.dtype)                  # lane-dense store


# --------------------------- batch-tile selection -----------------------------
def _choose_batch_tiling(B, target_tile, max_tile_vmem):
    """Pick (tile, padded_batch): lane-aligned, >=2 (even) grid steps when the
    batch allows it (v7x 2-TC sharding), tail waste bounded by n_tiles*128."""
    target = max(128, (min(target_tile, max_tile_vmem) // 128) * 128)
    b128 = pl.cdiv(B, 128) * 128
    if b128 <= 128:
        return 128, 128                       # tiny batch: one 128-lane tile
    n_tiles = max(2, pl.cdiv(b128, target))   # >= 2 steps -> both v7x TCs busy
    if n_tiles % 2:
        n_tiles += 1                          # even split across the 2 TCs
    tb = pl.cdiv(pl.cdiv(b128, n_tiles), 128) * 128
    return tb, n_tiles * tb


# ------------------------------ host wrapper ---------------------------------
def mlp_forward(x, params, *, batch_tile=8192):
    """x: (B, n_inputs) f32. params: list of 5 (W (out,in) f32, b (out,) f32)."""
    assert len(params) == 5, "kernel is specialized to the 5-layer grasp MLP"
    B, n_in = x.shape
    dims = [n_in] + [w.shape[0] for w, _ in params]
    out_dim = dims[-1]

    # --- VMEM budget (explicit, per perf review) ------------------------------
    # Per-batch-element bytes while one tile is in flight: double-buffered x/out
    # tiles plus the fused f32 pre-activations and bf16 activation copies
    # (sublane-padded).  Budget stays well under the v7x 64 MiB physical VMEM.
    hidden = dims[1:]
    act_f32 = sum(pl.cdiv(d, 8) * 8 * 4 for d in hidden)           # f32 pre-acts
    act_bf16 = sum(pl.cdiv(d, 16) * 16 * 2 for d in hidden[:-1])   # bf16 copies
    per_elem = 2 * n_in * 4 + 2 * out_dim * 4 + act_f32 + act_bf16
    weight_bytes = sum(w.size * 4 + b.size * 4 for w, b in params)
    vmem_soft_budget = 26 * 1024 * 1024
    vmem_limit_bytes = 32 * 1024 * 1024
    max_tile_vmem = max(128, ((vmem_soft_budget - weight_bytes) // per_elem)
                        // 128 * 128)

    tb, Bp = _choose_batch_tiling(B, batch_tile, max_tile_vmem)
    if Bp != B:
        # Tail padding only (no transpose / cast pass); padded columns produce
        # finite garbage that is sliced off below.
        x = jnp.pad(x, ((0, Bp - B), (0, 0)))

    flat = [x]
    in_specs = [pl.BlockSpec((tb, n_in), lambda i: (i, 0))]
    for li, (w, b) in enumerate(params):
        # Layers 1-3 feed the MXU in bf16; layers 4-5 run on the VPU in f32.
        w_dtype = jnp.bfloat16 if li < 3 else jnp.float32
        w_cast = w.astype(w_dtype)                           # (out, in)
        b_col = b.reshape(-1, 1).astype(jnp.float32)         # (out, 1)
        flat += [w_cast, b_col]
        # Constant index maps: weights/biases stay VMEM-resident across the grid.
        in_specs.append(pl.BlockSpec(w_cast.shape, lambda i: (0, 0)))
        in_specs.append(pl.BlockSpec(b_col.shape, lambda i: (0, 0)))

    flops = 2 * Bp * sum(dims[i] * dims[i + 1] for i in range(len(dims) - 1))
    transcendentals = Bp * sum(dims[1:-1])
    bytes_accessed = (Bp * n_in * 4 + Bp * out_dim * 4
                      + sum(f.size * f.dtype.itemsize for f in flat[1:]))

    out_t = pl.pallas_call(
        _mlp_kernel,
        out_shape=jax.ShapeDtypeStruct((out_dim, Bp), jnp.float32),
        grid=(Bp // tb,),
        in_specs=in_specs,
        out_specs=pl.BlockSpec((out_dim, tb), lambda i: (0, i)),
        compiler_params=pltpu.CompilerParams(
            dimension_semantics=("parallel",),
            vmem_limit_bytes=vmem_limit_bytes),
        cost_estimate=pl.CostEstimate(
            flops=flops,
            transcendentals=transcendentals,
            bytes_accessed=bytes_accessed),
    )(*flat)

    return out_t[:, :B].T  # back to (B, out_dim)


# --------------------------- parameter construction --------------------------
def make_params(key, n_inputs):
    """Weights in PyTorch (out_features, in_features) layout, xavier-uniform;
    biases U(-1/sqrt(fan_in), 1/sqrt(fan_in)) as in torch.nn.Linear."""
    dims = [n_inputs, 80, 40, 10, 8, 1]
    params = []
    for i in range(len(dims) - 1):
        fan_in, fan_out = dims[i], dims[i + 1]
        key, kw, kb = jax.random.split(key, 3)
        a = math.sqrt(6.0 / (fan_in + fan_out))
        w = jax.random.uniform(kw, (fan_out, fan_in), jnp.float32, -a, a)
        bound = 1.0 / math.sqrt(fan_in)
        b = jax.random.uniform(kb, (fan_out,), jnp.float32, -bound, bound)
        params.append((w, b))
    return params


# ------------------------------- references ----------------------------------
def mlp_ref(x, params, *, layer_dtypes=None):
    """Pure-JAX reference: y = sigmoid(...(x @ W1.T + b1)...) @ W5.T + b5.
    layer_dtypes optionally sets the matmul dtype per layer (accum stays f32)."""
    h = x
    n = len(params)
    for i, (w, b) in enumerate(params):
        dt = jnp.float32 if layer_dtypes is None else layer_dtypes[i]
        h = jnp.dot(h.astype(dt), w.T.astype(dt),
                    preferred_element_type=jnp.float32) + b
        if i < n - 1:
            h = jax.nn.sigmoid(h)
    return h


if __name__ == "__main__":
    key = jax.random.PRNGKey(0)
    k_x, k_p = jax.random.split(key)

    n_inputs = 16
    batch = 8
    x = jax.random.normal(k_x, (batch, n_inputs), jnp.float32)
    params = make_params(k_p, n_inputs)

    y = mlp_forward(x, params)
    jax.block_until_ready(y)
    assert y.shape == (batch, 1)

    # Tight check against a reference that mirrors the kernel's precision recipe
    # (bf16 MXU for layers 1-3, f32 for layers 4-5), plus a looser check against
    # the full-f32 reference.  NOTE: batch=8 only validates correctness; perf
    # tuning (tile size, binding unit) must be profiled at realistic batch sizes.
    mixed = [jnp.bfloat16, jnp.bfloat16, jnp.bfloat16, jnp.float32, jnp.float32]
    y_mixed_ref = mlp_ref(x, params, layer_dtypes=mixed)
    y_f32_ref = mlp_ref(x, params)
    assert jnp.allclose(y, y_mixed_ref, atol=2e-3, rtol=2e-3)
    assert jnp.allclose(y, y_f32_ref, atol=5e-2, rtol=5e-2)

    print("KERNEL_OK")
</pallas_src>

<mosaic_0001>
module attributes {stable_mosaic.version = 11 : i64} {
  func.func @_mlp_kernel(%arg0: i32, %arg1: memref<128x16xf32, #tpu.memory_space<vmem>>, %arg2: memref<80x16xbf16, #tpu.memory_space<vmem>>, %arg3: memref<80x1xf32, #tpu.memory_space<vmem>>, %arg4: memref<40x80xbf16, #tpu.memory_space<vmem>>, %arg5: memref<40x1xf32, #tpu.memory_space<vmem>>, %arg6: memref<10x40xbf16, #tpu.memory_space<vmem>>, %arg7: memref<10x1xf32, #tpu.memory_space<vmem>>, %arg8: memref<8x10xf32, #tpu.memory_space<vmem>>, %arg9: memref<8x1xf32, #tpu.memory_space<vmem>>, %arg10: memref<1x8xf32, #tpu.memory_space<vmem>>, %arg11: memref<1x1xf32, #tpu.memory_space<vmem>>, %arg12: memref<1x128xf32, #tpu.memory_space<vmem>>) attributes {dimension_semantics = [#tpu.dimension_semantics<parallel>], iteration_bounds = array<i64: 1>, scalar_prefetch = 0 : i64, scratch_operands = 0 : i64, tpu.core_type = #tpu.core_type<tc>, window_params = [{transform_indices = @transform_0, window_bounds = array<i64: 128, 16>}, {pipeline_mode = #tpu.pipeline_mode<synchronous>, transform_indices = @transform_1, window_bounds = array<i64: 80, 16>}, {pipeline_mode = #tpu.pipeline_mode<synchronous>, transform_indices = @transform_2, window_bounds = array<i64: 80, 1>}, {pipeline_mode = #tpu.pipeline_mode<synchronous>, transform_indices = @transform_3, window_bounds = array<i64: 40, 80>}, {pipeline_mode = #tpu.pipeline_mode<synchronous>, transform_indices = @transform_4, window_bounds = array<i64: 40, 1>}, {pipeline_mode = #tpu.pipeline_mode<synchronous>, transform_indices = @transform_5, window_bounds = array<i64: 10, 40>}, {pipeline_mode = #tpu.pipeline_mode<synchronous>, transform_indices = @transform_6, window_bounds = array<i64: 10, 1>}, {pipeline_mode = #tpu.pipeline_mode<synchronous>, transform_indices = @transform_7, window_bounds = array<i64: 8, 10>}, {pipeline_mode = #tpu.pipeline_mode<synchronous>, transform_indices = @transform_8, window_bounds = array<i64: 8, 1>}, {pipeline_mode = #tpu.pipeline_mode<synchronous>, transform_indices = @transform_9, window_bounds = array<i64: 1, 8>}, {pipeline_mode = #tpu.pipeline_mode<synchronous>, transform_indices = @transform_10, window_bounds = array<i64: 1, 1>}, {transform_indices = @transform_11, window_bounds = array<i64: 1, 128>}]} {
    %c0 = arith.constant 0 : index
    %c0_0 = arith.constant 0 : index
    %0 = vector.load %arg1[%c0, %c0_0] : memref<128x16xf32, #tpu.memory_space<vmem>>, vector<128x16xf32>
    %1 = arith.truncf %0 : vector<128x16xf32> to vector<128x16xbf16>
    %c0_1 = arith.constant 0 : index
    %c0_2 = arith.constant 0 : index
    %2 = vector.load %arg2[%c0_1, %c0_2] : memref<80x16xbf16, #tpu.memory_space<vmem>>, vector<80x16xbf16>
    %cst = arith.constant dense<0.000000e+00> : vector<80x128xf32>
    %3 = tpu.matmul %2, %1, %cst {dimension_numbers = #tpu.dot_dimension_numbers<[1], [1], [0], [0], [0, 0, 1, 0], [], []>} : vector<80x16xbf16>, vector<128x16xbf16>, vector<80x128xf32> -> vector<80x128xf32>
    %c0_3 = arith.constant 0 : index
    %c0_4 = arith.constant 0 : index
    %4 = vector.load %arg3[%c0_3, %c0_4] : memref<80x1xf32, #tpu.memory_space<vmem>>, vector<80x1xf32>
    %5 = vector.broadcast %4 : vector<80x1xf32> to vector<80x128xf32>
    %6 = arith.addf %3, %5 : vector<80x128xf32>
    %cst_5 = arith.constant 5.000000e-01 : f32
    %7 = vector.broadcast %cst_5 : f32 to vector<80x128xf32>
    %8 = arith.mulf %7, %6 : vector<80x128xf32>
    %9 = math.tanh %8 : vector<80x128xf32>
    %cst_6 = arith.constant 1.000000e+00 : f32
    %10 = vector.broadcast %cst_6 : f32 to vector<80x128xf32>
    %11 = arith.addf %9, %10 : vector<80x128xf32>
    %cst_7 = arith.constant 5.000000e-01 : f32
    %12 = vector.broadcast %cst_7 : f32 to vector<80x128xf32>
    %13 = arith.mulf %12, %11 : vector<80x128xf32>
    %14 = arith.truncf %13 : vector<80x128xf32> to vector<80x128xbf16>
    %c0_8 = arith.constant 0 : index
    %c0_9 = arith.constant 0 : index
    %15 = vector.load %arg4[%c0_8, %c0_9] : memref<40x80xbf16, #tpu.memory_space<vmem>>, vector<40x80xbf16>
    %cst_10 = arith.constant dense<0.000000e+00> : vector<40x128xf32>
    %16 = tpu.matmul %15, %14, %cst_10 {dimension_numbers = #tpu.dot_dimension_numbers<[1], [0], [0], [1], [0, 0, 1, 1], [], []>} : vector<40x80xbf16>, vector<80x128xbf16>, vector<40x128xf32> -> vector<40x128xf32>
    %c0_11 = arith.constant 0 : index
    %c0_12 = arith.constant 0 : index
    %17 = vector.load %arg5[%c0_11, %c0_12] : memref<40x1xf32, #tpu.memory_space<vmem>>, vector<40x1xf32>
    %18 = vector.broadcast %17 : vector<40x1xf32> to vector<40x128xf32>
    %19 = arith.addf %16, %18 : vector<40x128xf32>
    %cst_13 = arith.constant 5.000000e-01 : f32
    %20 = vector.broadcast %cst_13 : f32 to vector<40x128xf32>
    %21 = arith.mulf %20, %19 : vector<40x128xf32>
    %22 = math.tanh %21 : vector<40x128xf32>
    %cst_14 = arith.constant 1.000000e+00 : f32
    %23 = vector.broadcast %cst_14 : f32 to vector<40x128xf32>
    %24 = arith.addf %22, %23 : vector<40x128xf32>
    %cst_15 = arith.constant 5.000000e-01 : f32
    %25 = vector.broadcast %cst_15 : f32 to vector<40x128xf32>
    %26 = arith.mulf %25, %24 : vector<40x128xf32>
    %27 = arith.truncf %26 : vector<40x128xf32> to vector<40x128xbf16>
    %c0_16 = arith.constant 0 : index
    %c0_17 = arith.constant 0 : index
    %28 = vector.load %arg6[%c0_16, %c0_17] : memref<10x40xbf16, #tpu.memory_space<vmem>>, vector<10x40xbf16>
    %cst_18 = arith.constant dense<0.000000e+00> : vector<10x128xf32>
    %29 = tpu.matmul %28, %27, %cst_18 {dimension_numbers = #tpu.dot_dimension_numbers<[1], [0], [0], [1], [0, 0, 1, 1], [], []>} : vector<10x40xbf16>, vector<40x128xbf16>, vector<10x128xf32> -> vector<10x128xf32>
    %c0_19 = arith.constant 0 : index
    %c0_20 = arith.constant 0 : index
    %30 = vector.load %arg7[%c0_19, %c0_20] : memref<10x1xf32, #tpu.memory_space<vmem>>, vector<10x1xf32>
    %31 = vector.broadcast %30 : vector<10x1xf32> to vector<10x128xf32>
    %32 = arith.addf %29, %31 : vector<10x128xf32>
    %cst_21 = arith.constant 5.000000e-01 : f32
    %33 = vector.broadcast %cst_21 : f32 to vector<10x128xf32>
    %34 = arith.mulf %33, %32 : vector<10x128xf32>
    %35 = math.tanh %34 : vector<10x128xf32>
    %cst_22 = arith.constant 1.000000e+00 : f32
    %36 = vector.broadcast %cst_22 : f32 to vector<10x128xf32>
    %37 = arith.addf %35, %36 : vector<10x128xf32>
    %cst_23 = arith.constant 5.000000e-01 : f32
    %38 = vector.broadcast %cst_23 : f32 to vector<10x128xf32>
    %39 = arith.mulf %38, %37 : vector<10x128xf32>
    %c0_24 = arith.constant 0 : index
    %c0_25 = arith.constant 0 : index
    %40 = vector.load %arg8[%c0_24, %c0_25] : memref<8x10xf32, #tpu.memory_space<vmem>>, vector<8x10xf32>
    %41 = vector.extract_strided_slice %40 {offsets = [0, 0], sizes = [8, 1], strides = [1, 1]} : vector<8x10xf32> to vector<8x1xf32>
    %42 = vector.extract_strided_slice %39 {offsets = [0, 0], sizes = [1, 128], strides = [1, 1]} : vector<10x128xf32> to vector<1x128xf32>
    %43 = vector.broadcast %41 : vector<8x1xf32> to vector<8x128xf32>
    %44 = vector.broadcast %42 : vector<1x128xf32> to vector<8x128xf32>
    %45 = arith.mulf %43, %44 : vector<8x128xf32>
    %c0_26 = arith.constant 0 : index
    %c0_27 = arith.constant 0 : index
    %46 = vector.load %arg9[%c0_26, %c0_27] : memref<8x1xf32, #tpu.memory_space<vmem>>, vector<8x1xf32>
    %47 = vector.broadcast %46 : vector<8x1xf32> to vector<8x128xf32>
    %48 = arith.addf %45, %47 : vector<8x128xf32>
    %49 = vector.extract_strided_slice %40 {offsets = [0, 1], sizes = [8, 1], strides = [1, 1]} : vector<8x10xf32> to vector<8x1xf32>
    %50 = vector.extract_strided_slice %39 {offsets = [1, 0], sizes = [1, 128], strides = [1, 1]} : vector<10x128xf32> to vector<1x128xf32>
    %51 = vector.broadcast %49 : vector<8x1xf32> to vector<8x128xf32>
    %52 = vector.broadcast %50 : vector<1x128xf32> to vector<8x128xf32>
    %53 = arith.mulf %51, %52 : vector<8x128xf32>
    %54 = arith.addf %48, %53 : vector<8x128xf32>
    %55 = vector.extract_strided_slice %40 {offsets = [0, 2], sizes = [8, 1], strides = [1, 1]} : vector<8x10xf32> to vector<8x1xf32>
    %56 = vector.extract_strided_slice %39 {offsets = [2, 0], sizes = [1, 128], strides = [1, 1]} : vector<10x128xf32> to vector<1x128xf32>
    %57 = vector.broadcast %55 : vector<8x1xf32> to vector<8x128xf32>
    %58 = vector.broadcast %56 : vector<1x128xf32> to vector<8x128xf32>
    %59 = arith.mulf %57, %58 : vector<8x128xf32>
    %60 = arith.addf %54, %59 : vector<8x128xf32>
    %61 = vector.extract_strided_slice %40 {offsets = [0, 3], sizes = [8, 1], strides = [1, 1]} : vector<8x10xf32> to vector<8x1xf32>
    %62 = vector.extract_strided_slice %39 {offsets = [3, 0], sizes = [1, 128], strides = [1, 1]} : vector<10x128xf32> to vector<1x128xf32>
    %63 = vector.broadcast %61 : vector<8x1xf32> to vector<8x128xf32>
    %64 = vector.broadcast %62 : vector<1x128xf32> to vector<8x128xf32>
    %65 = arith.mulf %63, %64 : vector<8x128xf32>
    %66 = arith.addf %60, %65 : vector<8x128xf32>
    %67 = vector.extract_strided_slice %40 {offsets = [0, 4], sizes = [8, 1], strides = [1, 1]} : vector<8x10xf32> to vector<8x1xf32>
    %68 = vector.extract_strided_slice %39 {offsets = [4, 0], sizes = [1, 128], strides = [1, 1]} : vector<10x128xf32> to vector<1x128xf32>
    %69 = vector.broadcast %67 : vector<8x1xf32> to vector<8x128xf32>
    %70 = vector.broadcast %68 : vector<1x128xf32> to vector<8x128xf32>
    %71 = arith.mulf %69, %70 : vector<8x128xf32>
    %72 = arith.addf %66, %71 : vector<8x128xf32>
    %73 = vector.extract_strided_slice %40 {offsets = [0, 5], sizes = [8, 1], strides = [1, 1]} : vector<8x10xf32> to vector<8x1xf32>
    %74 = vector.extract_strided_slice %39 {offsets = [5, 0], sizes = [1, 128], strides = [1, 1]} : vector<10x128xf32> to vector<1x128xf32>
    %75 = vector.broadcast %73 : vector<8x1xf32> to vector<8x128xf32>
    %76 = vector.broadcast %74 : vector<1x128xf32> to vector<8x128xf32>
    %77 = arith.mulf %75, %76 : vector<8x128xf32>
    %78 = arith.addf %72, %77 : vector<8x128xf32>
    %79 = vector.extract_strided_slice %40 {offsets = [0, 6], sizes = [8, 1], strides = [1, 1]} : vector<8x10xf32> to vector<8x1xf32>
    %80 = vector.extract_strided_slice %39 {offsets = [6, 0], sizes = [1, 128], strides = [1, 1]} : vector<10x128xf32> to vector<1x128xf32>
    %81 = vector.broadcast %79 : vector<8x1xf32> to vector<8x128xf32>
    %82 = vector.broadcast %80 : vector<1x128xf32> to vector<8x128xf32>
    %83 = arith.mulf %81, %82 : vector<8x128xf32>
    %84 = arith.addf %78, %83 : vector<8x128xf32>
    %85 = vector.extract_strided_slice %40 {offsets = [0, 7], sizes = [8, 1], strides = [1, 1]} : vector<8x10xf32> to vector<8x1xf32>
    %86 = vector.extract_strided_slice %39 {offsets = [7, 0], sizes = [1, 128], strides = [1, 1]} : vector<10x128xf32> to vector<1x128xf32>
    %87 = vector.broadcast %85 : vector<8x1xf32> to vector<8x128xf32>
    %88 = vector.broadcast %86 : vector<1x128xf32> to vector<8x128xf32>
    %89 = arith.mulf %87, %88 : vector<8x128xf32>
    %90 = arith.addf %84, %89 : vector<8x128xf32>
    %91 = vector.extract_strided_slice %40 {offsets = [0, 8], sizes = [8, 1], strides = [1, 1]} : vector<8x10xf32> to vector<8x1xf32>
    %92 = vector.extract_strided_slice %39 {offsets = [8, 0], sizes = [1, 128], strides = [1, 1]} : vector<10x128xf32> to vector<1x128xf32>
    %93 = vector.broadcast %91 : vector<8x1xf32> to vector<8x128xf32>
    %94 = vector.broadcast %92 : vector<1x128xf32> to vector<8x128xf32>
    %95 = arith.mulf %93, %94 : vector<8x128xf32>
    %96 = arith.addf %90, %95 : vector<8x128xf32>
    %97 = vector.extract_strided_slice %40 {offsets = [0, 9], sizes = [8, 1], strides = [1, 1]} : vector<8x10xf32> to vector<8x1xf32>
    %98 = vector.extract_strided_slice %39 {offsets = [9, 0], sizes = [1, 128], strides = [1, 1]} : vector<10x128xf32> to vector<1x128xf32>
    %99 = vector.broadcast %97 : vector<8x1xf32> to vector<8x128xf32>
    %100 = vector.broadcast %98 : vector<1x128xf32> to vector<8x128xf32>
    %101 = arith.mulf %99, %100 : vector<8x128xf32>
    %102 = arith.addf %96, %101 : vector<8x128xf32>
    %cst_28 = arith.constant 5.000000e-01 : f32
    %103 = vector.broadcast %cst_28 : f32 to vector<8x128xf32>
    %104 = arith.mulf %103, %102 : vector<8x128xf32>
    %105 = math.tanh %104 : vector<8x128xf32>
    %cst_29 = arith.constant 1.000000e+00 : f32
    %106 = vector.broadcast %cst_29 : f32 to vector<8x128xf32>
    %107 = arith.addf %105, %106 : vector<8x128xf32>
    %cst_30 = arith.constant 5.000000e-01 : f32
    %108 = vector.broadcast %cst_30 : f32 to vector<8x128xf32>
    %109 = arith.mulf %108, %107 : vector<8x128xf32>
    %c0_31 = arith.constant 0 : index
    %c0_32 = arith.constant 0 : index
    %110 = vector.load %arg10[%c0_31, %c0_32] : memref<1x8xf32, #tpu.memory_space<vmem>>, vector<1x8xf32>
    %111 = vector.extract_strided_slice %110 {offsets = [0, 0], sizes = [1, 1], strides = [1, 1]} : vector<1x8xf32> to vector<1x1xf32>
    %112 = vector.extract_strided_slice %109 {offsets = [0, 0], sizes = [1, 128], strides = [1, 1]} : vector<8x128xf32> to vector<1x128xf32>
    %113 = vector.broadcast %111 : vector<1x1xf32> to vector<1x128xf32>
    %114 = arith.mulf %113, %112 : vector<1x128xf32>
    %c0_33 = arith.constant 0 : index
    %c0_34 = arith.constant 0 : index
    %115 = vector.load %arg11[%c0_33, %c0_34] : memref<1x1xf32, #tpu.memory_space<vmem>>, vector<1x1xf32>
    %116 = vector.broadcast %115 : vector<1x1xf32> to vector<1x128xf32>
    %117 = arith.addf %114, %116 : vector<1x128xf32>
    %118 = vector.extract_strided_slice %110 {offsets = [0, 1], sizes = [1, 1], strides = [1, 1]} : vector<1x8xf32> to vector<1x1xf32>
    %119 = vector.extract_strided_slice %109 {offsets = [1, 0], sizes = [1, 128], strides = [1, 1]} : vector<8x128xf32> to vector<1x128xf32>
    %120 = vector.broadcast %118 : vector<1x1xf32> to vector<1x128xf32>
    %121 = arith.mulf %120, %119 : vector<1x128xf32>
    %122 = arith.addf %117, %121 : vector<1x128xf32>
    %123 = vector.extract_strided_slice %110 {offsets = [0, 2], sizes = [1, 1], strides = [1, 1]} : vector<1x8xf32> to vector<1x1xf32>
    %124 = vector.extract_strided_slice %109 {offsets = [2, 0], sizes = [1, 128], strides = [1, 1]} : vector<8x128xf32> to vector<1x128xf32>
    %125 = vector.broadcast %123 : vector<1x1xf32> to vector<1x128xf32>
    %126 = arith.mulf %125, %124 : vector<1x128xf32>
    %127 = arith.addf %122, %126 : vector<1x128xf32>
    %128 = vector.extract_strided_slice %110 {offsets = [0, 3], sizes = [1, 1], strides = [1, 1]} : vector<1x8xf32> to vector<1x1xf32>
    %129 = vector.extract_strided_slice %109 {offsets = [3, 0], sizes = [1, 128], strides = [1, 1]} : vector<8x128xf32> to vector<1x128xf32>
    %130 = vector.broadcast %128 : vector<1x1xf32> to vector<1x128xf32>
    %131 = arith.mulf %130, %129 : vector<1x128xf32>
    %132 = arith.addf %127, %131 : vector<1x128xf32>
    %133 = vector.extract_strided_slice %110 {offsets = [0, 4], sizes = [1, 1], strides = [1, 1]} : vector<1x8xf32> to vector<1x1xf32>
    %134 = vector.extract_strided_slice %109 {offsets = [4, 0], sizes = [1, 128], strides = [1, 1]} : vector<8x128xf32> to vector<1x128xf32>
    %135 = vector.broadcast %133 : vector<1x1xf32> to vector<1x128xf32>
    %136 = arith.mulf %135, %134 : vector<1x128xf32>
    %137 = arith.addf %132, %136 : vector<1x128xf32>
    %138 = vector.extract_strided_slice %110 {offsets = [0, 5], sizes = [1, 1], strides = [1, 1]} : vector<1x8xf32> to vector<1x1xf32>
    %139 = vector.extract_strided_slice %109 {offsets = [5, 0], sizes = [1, 128], strides = [1, 1]} : vector<8x128xf32> to vector<1x128xf32>
    %140 = vector.broadcast %138 : vector<1x1xf32> to vector<1x128xf32>
    %141 = arith.mulf %140, %139 : vector<1x128xf32>
    %142 = arith.addf %137, %141 : vector<1x128xf32>
    %143 = vector.extract_strided_slice %110 {offsets = [0, 6], sizes = [1, 1], strides = [1, 1]} : vector<1x8xf32> to vector<1x1xf32>
    %144 = vector.extract_strided_slice %109 {offsets = [6, 0], sizes = [1, 128], strides = [1, 1]} : vector<8x128xf32> to vector<1x128xf32>
    %145 = vector.broadcast %143 : vector<1x1xf32> to vector<1x128xf32>
    %146 = arith.mulf %145, %144 : vector<1x128xf32>
    %147 = arith.addf %142, %146 : vector<1x128xf32>
    %148 = vector.extract_strided_slice %110 {offsets = [0, 7], sizes = [1, 1], strides = [1, 1]} : vector<1x8xf32> to vector<1x1xf32>
    %149 = vector.extract_strided_slice %109 {offsets = [7, 0], sizes = [1, 128], strides = [1, 1]} : vector<8x128xf32> to vector<1x128xf32>
    %150 = vector.broadcast %148 : vector<1x1xf32> to vector<1x128xf32>
    %151 = arith.mulf %150, %149 : vector<1x128xf32>
    %152 = arith.addf %147, %151 : vector<1x128xf32>
    %c0_35 = arith.constant 0 : index
    %c0_36 = arith.constant 0 : index
    %153 = vector.load %arg12[%c0_35, %c0_36] : memref<1x128xf32, #tpu.memory_space<vmem>>, vector<1x128xf32>
    tpu.vector_store %arg12[%c0_35, %c0_36], %152 {strides = array<i32>} : memref<1x128xf32, #tpu.memory_space<vmem>>, vector<1x128xf32>,
    return
  }
  func.func @transform_0(%arg0: i32) -> (i32, i32) {
    %c0_i32 = arith.constant 0 : i32
    %c0_i32_0 = arith.constant 0 : i32
    return %arg0, %c0_i32 : i32, i32
  }
  func.func @transform_1(%arg0: i32) -> (i32, i32) {
    %c0_i32 = arith.constant 0 : i32
    %c0_i32_0 = arith.constant 0 : i32
    %c0_i32_1 = arith.constant 0 : i32
    return %c0_i32, %c0_i32_0 : i32, i32
  }
  func.func @transform_2(%arg0: i32) -> (i32, i32) {
    %c0_i32 = arith.constant 0 : i32
    %c0_i32_0 = arith.constant 0 : i32
    %c0_i32_1 = arith.constant 0 : i32
    return %c0_i32, %c0_i32_0 : i32, i32
  }
  func.func @transform_3(%arg0: i32) -> (i32, i32) {
    %c0_i32 = arith.constant 0 : i32
    %c0_i32_0 = arith.constant 0 : i32
    %c0_i32_1 = arith.constant 0 : i32
    return %c0_i32, %c0_i32_0 : i32, i32
  }
  func.func @transform_4(%arg0: i32) -> (i32, i32) {
    %c0_i32 = arith.constant 0 : i32
    %c0_i32_0 = arith.constant 0 : i32
    %c0_i32_1 = arith.constant 0 : i32
    return %c0_i32, %c0_i32_0 : i32, i32
  }
  func.func @transform_5(%arg0: i32) -> (i32, i32) {
    %c0_i32 = arith.constant 0 : i32
    %c0_i32_0 = arith.constant 0 : i32
    %c0_i32_1 = arith.constant 0 : i32
    return %c0_i32, %c0_i32_0 : i32, i32
  }
  func.func @transform_6(%arg0: i32) -> (i32, i32) {
    %c0_i32 = arith.constant 0 : i32
    %c0_i32_0 = arith.constant 0 : i32
    %c0_i32_1 = arith.constant 0 : i32
    return %c0_i32, %c0_i32_0 : i32, i32
  }
  func.func @transform_7(%arg0: i32) -> (i32, i32) {
    %c0_i32 = arith.constant 0 : i32
    %c0_i32_0 = arith.constant 0 : i32
    %c0_i32_1 = arith.constant 0 : i32
    return %c0_i32, %c0_i32_0 : i32, i32
  }
  func.func @transform_8(%arg0: i32) -> (i32, i32) {
    %c0_i32 = arith.constant 0 : i32
    %c0_i32_0 = arith.constant 0 : i32
    %c0_i32_1 = arith.constant 0 : i32
    return %c0_i32, %c0_i32_0 : i32, i32
  }
  func.func @transform_9(%arg0: i32) -> (i32, i32) {
    %c0_i32 = arith.constant 0 : i32
    %c0_i32_0 = arith.constant 0 : i32
    %c0_i32_1 = arith.constant 0 : i32
    return %c0_i32, %c0_i32_0 : i32, i32
  }
  func.func @transform_10(%arg0: i32) -> (i32, i32) {
    %c0_i32 = arith.constant 0 : i32
    %c0_i32_0 = arith.constant 0 : i32
    %c0_i32_1 = arith.constant 0 : i32
    return %c0_i32, %c0_i32_0 : i32, i32
  }
  func.func @transform_11(%arg0: i32) -> (i32, i32) {
    %c0_i32 = arith.constant 0 : i32
    %c0_i32_0 = arith.constant 0 : i32
    return %c0_i32, %arg0 : i32, i32
  }
}

</mosaic_0001>

<bundles_post_ra>
// kernel: tpu_custom_call.1
= control target key start
LH: loop header
LB: loop body
LE: loop exit
PB: predicated region body
PF: predicated region fallthrough
CT: control target
= control target key end

     0   :  { %s1283_s0 = inlined_call_operand.vmem [shape: f32[128,16], index: 0, kind: input, shape index: {}]   ;;  %s1284_s1 = inlined_call_operand.vmem [shape: bf16[80,16], index: 1, kind: input, shape index: {}]   ;;  %s1285_s2 = inlined_call_operand.vmem [shape: f32[80,1], index: 2, kind: input, shape index: {}]   ;;  %s1286_s3 = inlined_call_operand.vmem [shape: bf16[40,80], index: 3, kind: input, shape index: {}]   ;;  %s1287_s4 = inlined_call_operand.vmem [shape: f32[40,1], index: 4, kind: input, shape index: {}]   ;;  %s1288_s5 = inlined_call_operand.vmem [shape: bf16[10,40], index: 5, kind: input, shape index: {}]   ;;  %s1289_s6 = inlined_call_operand.vmem [shape: f32[10,1], index: 6, kind: input, shape index: {}]   ;;  %s1290_s7 = inlined_call_operand.vmem [shape: f32[8,10], index: 7, kind: input, shape index: {}]   ;;  %s1291_s8 = inlined_call_operand.vmem [shape: f32[8,1], index: 8, kind: input, shape index: {}]   ;;  %s1292_s9 = inlined_call_operand.vmem [shape: f32[1,8], index: 9, kind: input, shape index: {}]   ;;  %s1293_s10 = inlined_call_operand.<no memory space> [shape: f32[1,1], index: 10, kind: input, shape index: {}]   ;;  %s1294_s11 = inlined_call_operand.hbm [shape: f32[1,128], index: 11, kind: output, shape index: {}]  }
   0x1   :  { %v16_v0 = vstv %s1293_s10 }
   0x2   :  { %17 = vst [vmem:[#allocation2] sm:$0x1] %v16_v0 }
   0x3   :  { %v42_v1 = vld [vmem:[%s1283_s0] sm:$0xff]  ;;  %v43_v2 = vld [vmem:[%s1283_s0 + $0x8] sm:$0xff]  ;;  %vm161_vm0 = vcmask 130048   ;;  %v985_v3 = vmov 0.0   ;;  %v44_v5 = vld [vmem:[%s1283_s0 + $0x10] sm:$0xff]  ;;  %vm986_vm1 = vmmov 0  }
   0x4   :  { %815 = vmatprep.subr.bf16.mxu0 %v985_v3  ;;  %v58_v4 = vpack.c.bf16 %v43_v2, %v42_v1  ;;  %v45_v6 = vld [vmem:[%s1283_s0 + $0x18] sm:$0xff]  ;;  %831 = vmatprep.mubr.msk.bf16.mxu0 %vm986_vm1, %v985_v3  ;;  %v987_v7 = vmov 0   ;;  %v46_v10 = vld [vmem:[%s1283_s0 + $0x20] sm:$0xff]  ;;  %v47_v12 = vld [vmem:[%s1283_s0 + $0x28] sm:$0xff] }
   0x5   :  { %896 = vset.pattern.permute.xlu0 %v987_v7  ;;  %897 = vset.pattern.permute.xlu1 %v987_v7  ;;  %v59_v9 = vpack.c.bf16 %v45_v6, %v44_v5  ;;  %v76_v13 = vld [vmem:[%s1285_s2] sm:$0xff]  ;;  %v78_v14 = vld [vmem:[%s1285_s2 + $0x10] sm:$0xff]  ;;  %v60_v15 = vpack.c.bf16 %v47_v12, %v46_v10  ;;  %v77_v16 = vld [vmem:[%s1285_s2 + $0x8] sm:$0xff] }
   0x6   :  { %v178_v8 = vsel %vm161_vm0, %v58_v4, 0  ;;  %851 = vmatprep.subr.bf16.mxu1 %v985_v3  ;;  %861 = vmatprep.mubr.msk.bf16.mxu1 %vm986_vm1, %v985_v3  ;;  %v79_v17 = vld [vmem:[%s1285_s2 + $0x18] sm:$0xff]  ;;  %v48_v19 = vld [vmem:[%s1283_s0 + $0x30] sm:$0xff]  ;;  %v80_v21 = vld [vmem:[%s1285_s2 + $0x20] sm:$0xff] }
   0x7   :  { %816 = vmatpush3.bf16.xpose.msra.mxu0 %v178_v8  ;;  %v181_v11 = vsel %vm161_vm0, %v59_v9, 0  ;;  %88 = vperm.xlu0 %896, %v76_v13   ;;  %v184_v18 = vsel %vm161_vm0, %v60_v15, 0  ;;  %v49_v20 = vld [vmem:[%s1283_s0 + $0x38] sm:$0xff]  ;;  %v81_v22 = vld [vmem:[%s1285_s2 + $0x28] sm:$0xff] }
   0x8   :  { %817 = vmatprep.subr.bf16.mxu0 %v985_v3  ;;  %98 = vperm.xlu1 %897, %v78_v14  }
   0xb   :  { %93 = vperm.xlu0 %896, %v77_v16  }
   0xc   :  { %103 = vperm.xlu1 %897, %v79_v17  }
   0xf   :  { %818 = vmatpush3.bf16.xpose.msra.mxu0 %v181_v11  ;;  %108 = vperm.xlu0 %896, %v80_v21  }
  0x10   :  { %819 = vmatprep.subr.bf16.mxu0 %v985_v3 }
  0x11   :  { %18 = vsyncpa [#allocation4], 0  ;;  %v82_v23 = vld [vmem:[%s1285_s2 + $0x30] sm:$0xff]  ;;  %113 = vperm.xlu1 %897, %v81_v22   ;;  %v61_v24 = vpack.c.bf16 %v49_v20, %v48_v19  ;;  %v83_v25 = vld [vmem:[%s1285_s2 + $0x38] sm:$0xff]  ;;  %vm367_vm2 = vcmask 654336   ;;  %vm479_vm3 = vcmask 1043456  }
  0x12   :  { %v84_v26 = vld [vmem:[%s1285_s2 + $0x40] sm:$0xff]  ;;  %v85_v28 = vld [vmem:[%s1285_s2 + $0x48] sm:$0xff]  ;;  %v326_v34 = vld [vmem:[%s1287_s4 + $0x10] sm:$0xff]  ;;  %vm475_vm4 = vcmask 326656  }
  0x13   :  { %118 = vperm.xlu0 %896, %v82_v23   ;;  %v187_v27 = vsel %vm161_vm0, %v61_v24, 0  ;;  %v50_v29 = vld [vmem:[%s1283_s0 + $0x40] sm:$0xff]  ;;  %v51_v30 = vld [vmem:[%s1283_s0 + $0x48] sm:$0xff]  ;;  %v327_v36 = vld [vmem:[%s1287_s4 + $0x18] sm:$0xff] }
  0x14   :  { %v324_v31 = vld [vmem:[%s1287_s4] sm:$0xff]  ;;  %v62_v32 = vpack.c.bf16 %v51_v30, %v50_v29  ;;  %v325_v33 = vld [vmem:[%s1287_s4 + $0x8] sm:$0xff]  ;;  %v52_v37 = vld [vmem:[%s1283_s0 + $0x50] sm:$0xff] }
  0x15   :  { %123 = vperm.xlu1 %897, %v83_v25   ;;  %v53_v38 = vld [vmem:[%s1283_s0 + $0x58] sm:$0xff]  ;;  %v328_v39 = vld [vmem:[%s1287_s4 + $0x20] sm:$0xff]  ;;  %v459_v42 = vld [vmem:[%s1289_s6 + $0x8] sm:$0x3] }
  0x16   :  { %v190_v35 = vsel %vm161_vm0, %v62_v32, 0  ;;  %v63_v40 = vpack.c.bf16 %v53_v38, %v52_v37  ;;  %v458_v41 = vld [vmem:[%s1289_s6] sm:$0xff]  ;;  %v55_v46 = vld [vmem:[%s1283_s0 + $0x68] sm:$0xff]  ;;  %v56_v50 = vld [vmem:[%s1283_s0 + $0x70] sm:$0xff] }
  0x17   :  { %820 = vmatpush3.bf16.xpose.msra.mxu0 %v184_v18  ;;  %128 = vperm.xlu0 %896, %v84_v26   ;;  %v1170_v44 = vld [vmem:[%s1290_s7] sm:$0xff]  ;;  %v57_v51 = vld [vmem:[%s1283_s0 + $0x78] sm:$0xff]  ;;  %v917_v55 = vld [vmem:[%s1284_s1 + $0x8] sm:$0xff]  }
  0x18   :  { %821 = vmatprep.subr.bf16.mxu0 %v985_v3  ;;  %v193_v43 = vsel %vm161_vm0, %v63_v40, 0  ;;  %v54_v45 = vld [vmem:[%s1283_s0 + $0x60] sm:$0xff]  ;;  %v65_v52 = vpack.c.bf16 %v57_v51, %v56_v50  ;;  %v918_v56 = vld [vmem:[%s1284_s1 + $0x10] sm:$0xff]   ;;  %v919_v57 = vld [vmem:[%s1284_s1 + $0x18] sm:$0xff]  }
  0x19   :  { %133 = vperm.xlu1 %897, %v85_v28   ;;  %v543_v47 = vld [vmem:[%s1291_s8] sm:$0xff]  ;;  %v64_v48 = vpack.c.bf16 %v55_v46, %v54_v45 }
  0x1a   :  { %v199_v53 = vsel %vm161_vm0, %v65_v52, 0  ;;  %v916_v54 = vld [vmem:[%s1284_s1] sm:$0xff]  }
  0x1b   :  { %331 = vperm.xlu0 %896, %v324_v31   ;;  %v196_v49 = vsel %vm161_vm0, %v64_v48, 0  ;;  %v920_v58 = vld [vmem:[%s1284_s1 + $0x20] sm:$0xff]  }
  0x1d   :  { %336 = vperm.xlu1 %897, %v325_v33  }
  0x1f   :  { %822 = vmatpush3.bf16.xpose.msra.mxu0 %v187_v27  ;;  %341 = vperm.xlu0 %896, %v326_v34  }
  0x20   :  { %823 = vmatprep.subr.bf16.mxu0 %v985_v3 }
  0x21   :  { %346 = vperm.xlu1 %897, %v327_v36  }
  0x23   :  { %351 = vperm.xlu0 %896, %v328_v39  }
  0x25   :  { %462 = vperm.xlu1 %897, %v458_v41  }
  0x27   :  { %824 = vmatpush3.bf16.xpose.msra.mxu0 %v190_v35  ;;  %467 = vperm.xlu0 %896, %v459_v42  }
  0x28   :  { %825 = vmatprep.subr.bf16.mxu0 %v985_v3 }
  0x29   :  { %535 = vperm.xlu1 %897, %v1170_v44  }
  0x2b   :  { %546 = vperm.xlu0 %896, %v543_v47  }
  0x2f   :  { %826 = vmatpush3.bf16.xpose.msra.mxu0 %v193_v43 }
  0x30   :  { %827 = vmatprep.subr.bf16.mxu0 %v985_v3 }
  0x37   :  { %828 = vmatpush3.bf16.xpose.msra.mxu0 %v196_v49 }
  0x38   :  { %829 = vmatprep.subr.bf16.mxu0 %v985_v3 }
  0x3f   :  { %830 = vmatpush3.bf16.xpose.msra.mxu0 %v199_v53 }
  0x46   :  { %832 = vmatmul.mubr.msk.bf16.vlgmr.msra.gmra.mrb[0].mxu0 %vm161_vm0, %v916_v54 }
  0x47   :  { %835 = vmatprep.mubr.msk.bf16.mxu0 %vm986_vm1, %v985_v3 }
  0x4e   :  { %836 = vmatmul.mubr.msk.bf16.gmra.mrb[4].mxu0 %vm161_vm0, %v917_v55 }
  0x4f   :  { %839 = vmatprep.mubr.msk.bf16.mxu0 %vm986_vm1, %v985_v3 }
  0x56   :  { %840 = vmatmul.mubr.msk.bf16.gmra.mrb[8].mxu0 %vm161_vm0, %v918_v56 }
  0x57   :  { %843 = vmatprep.mubr.msk.bf16.mxu0 %vm986_vm1, %v985_v3 }
  0x5e   :  { %844 = vmatmul.mubr.msk.bf16.gmra.mrb[12].mxu0 %vm161_vm0, %v919_v57 }
  0x5f   :  { %847 = vmatprep.mubr.msk.bf16.mxu0 %vm986_vm1, %v985_v3 }
  0x66   :  { %848 = vmatmul.mubr.msk.bf16.gmra.mrb[16].mxu0 %vm161_vm0, %v920_v58 }
  0x86   :  { %v89_v59 = vpop.permute.xlu0 %88 }
  0x87   :  { %v99_v5 = vpop.permute.xlu1 %98 }
  0x8a   :  { %v94_v63 = vpop.permute.xlu0 %93 }
  0x8b   :  { %v104_v11 = vpop.permute.xlu1 %103 }
  0x8e   :  { %v109_v18 = vpop.permute.xlu0 %108 }
  0x90   :  { %v114_v24 = vpop.permute.xlu1 %113 }
  0x92   :  { %v119_v35 = vpop.permute.xlu0 %118 }
  0x94   :  { %v124_v41 = vpop.permute.xlu1 %123 }
  0x96   :  { %v129_v53 = vpop.permute.xlu0 %128 }
 0x119   :  { %v235_v60 = vpop.f32.mrb[0].mxu0 }
 0x11a   :  { %v236_v61 = vadd.f32 %v235_v60, %v89_v59  ;;  %v833_v62 = vpop.f32.mrb[1].mxu0  ;;  %v134_v59 = vpop.permute.xlu1 %133 }
 0x11b   :  { %v238_v0 = vpop.f32.mrb[2].mxu0 }
 0x11c   :  { %v274_v1 = vmul.f32 0.5, %v236_v61  ;;  %v239_v2 = vadd.f32 %v238_v0, %v94_v63  ;;  %v834_v4 = vpop.f32.mrb[3].mxu0 }
 0x11e   :  { %925 = vtanh.f32 %v274_v1  ;;  %v275_v6 = vmul.f32 0.5, %v239_v2 }
 0x120   :  { %927 = vtanh.f32 %v275_v6 }
 0x121   :  { %v243_v8 = vpop.f32.mrb[4].mxu0 }
 0x122   :  { %v244_v9 = vadd.f32 %v243_v8, %v99_v5  ;;  %v837_v10 = vpop.f32.mrb[5].mxu0 }
 0x123   :  { %v246_v12 = vpop.f32.mrb[6].mxu0 }
 0x124   :  { %v276_v13 = vmul.f32 0.5, %v244_v9  ;;  %v247_v14 = vadd.f32 %v246_v12, %v104_v11  ;;  %v838_v15 = vpop.f32.mrb[7].mxu0 }
 0x126   :  { %929 = vtanh.f32 %v276_v13  ;;  %v277_v16 = vmul.f32 0.5, %v247_v14 }
 0x128   :  { %v926_v17 = vpop.eup %925  ;;  %931 = vtanh.f32 %v277_v16 }
 0x129   :  { %v251_v19 = vpop.f32.mrb[8].mxu0  ;;  %v294_v20 = vadd.f32 1.0, %v926_v17 }
 0x12a   :  { %v928_v21 = vpop.eup %927  ;;  %v252_v22 = vadd.f32 %v251_v19, %v109_v18  ;;  %v841_v23 = vpop.f32.mrb[9].mxu0 }
 0x12b   :  { %v254_v25 = vpop.f32.mrb[10].mxu0  ;;  %v295_v26 = vadd.f32 1.0, %v928_v21  ;;  %v304_v30 = vmul.f32 0.5, %v294_v20  ;;  %v921_v21 = vld [vmem:[%s1286_s3] sm:$0xff]   ;;  %v923_v23 = vld [vmem:[%s1286_s3 + $0x10] ss:$0 sps:$4 sm:$0xff]  }
 0x12c   :  { %v278_v27 = vmul.f32 0.5, %v252_v22  ;;  %v255_v28 = vadd.f32 %v254_v25, %v114_v24  ;;  %v842_v29 = vpop.f32.mrb[11].mxu0  ;;  %v922_v22 = vld [vmem:[%s1286_s3 + $0x8] sm:$0xff]   ;;  %v988_v24 = vmov 1   ;;  %v989_v25 = vmov 2  }
 0x12d   :  { %v305_v31 = vmul.f32 0.5, %v295_v26  ;;  %898 = vset.pattern.permute.xlu1 %v988_v24  ;;  %899 = vset.pattern.permute.xlu0 %v989_v25  ;;  %v990_v26 = vmov 3   ;;  %v993_v29 = vmov 8  }
 0x12e   :  { %933 = vtanh.f32 %v278_v27  ;;  %v279_v32 = vmul.f32 0.5, %v255_v28  ;;  %551 = vperm.xlu1 %898, %v1170_v44   ;;  %561 = vperm.xlu0 %899, %v1170_v44   ;;  %v991_v27 = vmov 5   ;;  %v992_v28 = vmov 4  }
 0x12f   :  { %v314_v33 = vpack.c.bf16 %v305_v31, %v304_v30  ;;  %v994_v30 = vmov 6   ;;  %v644_v31 = vld [vmem:[%s1292_s9] sm:$0x1] }
 0x130   :  { %v930_v34 = vpop.eup %929  ;;  %935 = vtanh.f32 %v279_v32  ;;  %v995_v32 = vmov 7  }
 0x131   :  { %v296_v36 = vadd.f32 1.0, %v930_v34  ;;  %v259_v37 = vpop.f32.mrb[12].mxu0  ;;  %852 = vmatpush3.bf16.msra.mxu1 %v314_v33  ;;  %v996_v33 = vmov 9   ;;  %v655_v34 = vld [vmem:[#allocation2] sm:$0x1] }
 0x132   :  { %v932_v38 = vpop.eup %931  ;;  %v260_v39 = vadd.f32 %v259_v37, %v119_v35  ;;  %v845_v40 = vpop.f32.mrb[13].mxu0  ;;  %853 = vmatprep.subr.bf16.mxu1 %v985_v3  ;;  %900 = vset.pattern.permute.xlu1 %v990_v26 }
 0x133   :  { %v297_v42 = vadd.f32 1.0, %v932_v38  ;;  %v262_v43 = vpop.f32.mrb[14].mxu0  ;;  %v306_v48 = vmul.f32 0.5, %v296_v36  ;;  %571 = vperm.xlu1 %900, %v1170_v44   ;;  %902 = vset.pattern.permute.xlu0 %v991_v27  ;;  %v332_v35 = vpop.permute.xlu0 %331 }
 0x134   :  { %v280_v45 = vmul.f32 0.5, %v260_v39  ;;  %v263_v46 = vadd.f32 %v262_v43, %v124_v41  ;;  %v846_v47 = vpop.f32.mrb[15].mxu0  ;;  %591 = vperm.xlu0 %902, %v1170_v44   ;;  %v337_v38 = vpop.permute.xlu1 %336 }
 0x135   :  { %v307_v49 = vmul.f32 0.5, %v297_v42 }
 0x136   :  { %937 = vtanh.f32 %v280_v45  ;;  %v281_v50 = vmul.f32 0.5, %v263_v46 }
 0x137   :  { %v315_v51 = vpack.c.bf16 %v307_v49, %v306_v48  ;;  %901 = vset.pattern.permute.xlu1 %v992_v28  ;;  %v342_v43 = vpop.permute.xlu0 %341 }
 0x138   :  { %v934_v52 = vpop.eup %933  ;;  %939 = vtanh.f32 %v281_v50  ;;  %581 = vperm.xlu1 %901, %v1170_v44   ;;  %905 = vset.pattern.permute.xlu0 %v993_v29  ;;  %v347_v48 = vpop.permute.xlu1 %346 }
 0x139   :  { %v298_v54 = vadd.f32 1.0, %v934_v52  ;;  %v267_v55 = vpop.f32.mrb[16].mxu0  ;;  %854 = vmatpush3.bf16.msra.mxu1 %v315_v51  ;;  %621 = vperm.xlu0 %905, %v1170_v44  }
 0x13a   :  { %v936_v56 = vpop.eup %935  ;;  %v268_v57 = vadd.f32 %v267_v55, %v129_v53  ;;  %v849_v58 = vpop.f32.mrb[17].mxu0  ;;  %855 = vmatprep.subr.bf16.mxu1 %v985_v3 }
 0x13b   :  { %v299_v60 = vadd.f32 1.0, %v936_v56  ;;  %v270_v61 = vpop.f32.mrb[18].mxu0  ;;  %v308_v1 = vmul.f32 0.5, %v298_v54  ;;  %v352_v55 = vpop.permute.xlu0 %351 }
 0x13c   :  { %v282_v62 = vmul.f32 0.5, %v268_v57  ;;  %v271_v63 = vadd.f32 %v270_v61, %v134_v59  ;;  %v850_v0 = vpop.f32.mrb[19].mxu0  ;;  %903 = vset.pattern.permute.xlu1 %v994_v30 }
 0x13d   :  { %v309_v2 = vmul.f32 0.5, %v299_v60  ;;  %601 = vperm.xlu1 %903, %v1170_v44   ;;  %908 = vset.pattern.permute.xlu0 %v988_v24 }
 0x13e   :  { %941 = vtanh.f32 %v282_v62  ;;  %v283_v4 = vmul.f32 0.5, %v271_v63  ;;  %667 = vperm.xlu0 %908, %v644_v31  }
 0x13f   :  { %v316_v5 = vpack.c.bf16 %v309_v2, %v308_v1 }
 0x140   :  { %v938_v6 = vpop.eup %937  ;;  %943 = vtanh.f32 %v283_v4 }
 0x141   :  { %v300_v8 = vadd.f32 1.0, %v938_v6  ;;  %856 = vmatpush3.bf16.msra.mxu1 %v316_v5  ;;  %904 = vset.pattern.permute.xlu1 %v995_v32 }
 0x142   :  { %v940_v9 = vpop.eup %939  ;;  %857 = vmatprep.subr.bf16.mxu1 %v985_v3  ;;  %611 = vperm.xlu1 %904, %v1170_v44  }
 0x143   :  { %v301_v10 = vadd.f32 1.0, %v940_v9  ;;  %v310_v11 = vmul.f32 0.5, %v300_v8  ;;  %910 = vset.pattern.permute.xlu0 %v990_v26 }
 0x144   :  { %693 = vperm.xlu0 %910, %v644_v31  }
 0x145   :  { %v311_v12 = vmul.f32 0.5, %v301_v10 }
 0x146   :  { %906 = vset.pattern.permute.xlu1 %v996_v33 }
 0x147   :  { %v317_v13 = vpack.c.bf16 %v311_v12, %v310_v11  ;;  %631 = vperm.xlu1 %906, %v1170_v44  }
 0x148   :  { %v942_v14 = vpop.eup %941  ;;  %913 = vset.pattern.permute.xlu0 %v994_v30  ;;  %v538_v30 = vlaneseq }
 0x149   :  { %v302_v15 = vadd.f32 1.0, %v942_v14  ;;  %858 = vmatpush3.bf16.msra.mxu1 %v317_v13  ;;  %732 = vperm.xlu0 %913, %v644_v31  }
 0x14a   :  { %v944_v16 = vpop.eup %943  ;;  %859 = vmatprep.subr.bf16.mxu1 %v985_v3 }
 0x14b   :  { %v303_v17 = vadd.f32 1.0, %v944_v16  ;;  %v312_v18 = vmul.f32 0.5, %v302_v15  ;;  %907 = vset.pattern.permute.xlu1 %v987_v7 }
 0x14c   :  { %647 = vperm.xlu1 %907, %v644_v31  }
 0x14d   :  { %v313_v19 = vmul.f32 0.5, %v303_v17  ;;  %915 = vset.pattern.permute.xlu0 %v995_v32 }
 0x14f   :  { %v318_v20 = vpack.c.bf16 %v313_v19, %v312_v18  ;;  %v924_v18 = vld [vmem:[%s1288_s5] sm:$0x1f]   ;;  %v463_v19 = vpop.permute.xlu1 %462  ;;  %s997_s5 = smov [#allocation3]  }
 0x150   :  { %658 = vperm.xlu1 %907, %v655_v34   ;;  %s764_s18 = sshll.u32 %s997_s5, 4  ;;  %s765_s18 = int_to_ptr.vmem [resolvable:$true] %s764_s18 }
 0x151   :  { %860 = vmatpush3.bf16.msra.mxu1 %v318_v20  ;;  %s961_s19 = scalar_lea.vmem %s765_s18, 16  ;;  %s965_s20 = scalar_lea.vmem %s765_s18, 32 }
 0x152   :  { %873 = vmatprep.subr.bf16.mxu1 %v985_v3  ;;  %p962_p0 = scmp.ne.s32.totalorder %s765_s18, %s961_s19  ;;  %p966_p1 = scmp.lt.s32.totalorder %s765_s18, %s765_s18 }
 0x153   :  { %v536_v20 = vpop.permute.xlu1 %535  ;;  %p967_p2 = scmp.lt.s32.totalorder %s965_s20, %s961_s19 }
 0x154   :  { %862 = vmatmul.mubr.msk.bf16.vlgmr.msra.gmra.mrb[0].mxu1 %vm367_vm2, %v921_v21  ;;  %909 = vset.pattern.permute.xlu1 %v989_v25 }
 0x155   :  { %865 = vmatprep.mubr.msk.bf16.mxu1 %vm986_vm1, %v985_v3  ;;  %680 = vperm.xlu1 %909, %v644_v31   ;;  %p968_p3 = por %p967_p2, %p966_p1 }
 0x157   :  { %p969_p4 = pnand %p968_p3, %p962_p0 }
 0x159   :  { %911 = vset.pattern.permute.xlu1 %v992_v28 }
 0x15a   :  { %706 = vperm.xlu1 %911, %v644_v31  }
 0x15c   :  { %866 = vmatmul.mubr.msk.bf16.gmra.mrb[4].mxu1 %vm367_vm2, %v922_v22 }
 0x15d   :  { %869 = vmatprep.mubr.msk.bf16.mxu1 %vm986_vm1, %v985_v3 }
 0x15e   :  { %912 = vset.pattern.permute.xlu1 %v991_v27  ;;  %v468_v27 = vpop.permute.xlu0 %467 }
 0x15f   :  { %719 = vperm.xlu1 %912, %v644_v31  }
 0x163   :  { %914 = vset.pattern.permute.xlu1 %v995_v32  ;;  %v539_v32 = vshrl.u32 %v538_v30, 7 }
 0x164   :  { %870 = vmatmul.mubr.msk.bf16.gmra.mrb[8].mxu1 %vm367_vm2, %v923_v23  ;;  %745 = vperm.xlu1 %914, %v644_v31  }
 0x165   :  { %879 = vmatprep.mubr.msk.bf16.mxu1 %vm986_vm1, %v985_v3 }
 0x1ad   :  { %v552_v22 = vpop.permute.xlu1 %551 }
 0x1b2   :  { %v572_v29 = vpop.permute.xlu1 %571 }
 0x1b7   :  { %v582_v33 = vpop.permute.xlu1 %581 }
 0x227   :  { %v411_v36 = vpop.f32.mrb[0].mxu1 }
 0x228   :  { %v412_v37 = vadd.f32 %v411_v36, %v332_v35  ;;  %v863_v44 = vpop.f32.mrb[1].mxu1  ;;  %v1258_v36 = vsub.s32 0, %v539_v32 }
 0x229   :  { %v414_v39 = vpop.f32.mrb[2].mxu1 }
 0x22a   :  { %v433_v40 = vmul.f32 0.5, %v412_v37  ;;  %v415_v7 = vadd.f32 %v414_v39, %v337_v38  ;;  %v864_v41 = vpop.f32.mrb[3].mxu1  ;;  %v556_v37 = vsub.s32 1, %v539_v32  ;;  %v602_v38 = vpop.permute.xlu1 %601  ;;  %v566_v39 = vsub.s32 2, %v539_v32 }
 0x22c   :  { %945 = vtanh.f32 %v433_v40  ;;  %v434_v42 = vmul.f32 0.5, %v415_v7  ;;  %v547_v40 = vpop.permute.xlu0 %546 }
 0x22e   :  { %947 = vtanh.f32 %v434_v42  ;;  %v576_v42 = vsub.s32 3, %v539_v32 }
 0x22f   :  { %v419_v45 = vpop.f32.mrb[4].mxu1 }
 0x230   :  { %v420_v46 = vadd.f32 %v419_v45, %v342_v43  ;;  %v867_v47 = vpop.f32.mrb[5].mxu1  ;;  %v586_v45 = vsub.s32 4, %v539_v32 }
 0x231   :  { %v422_v49 = vpop.f32.mrb[6].mxu1 }
 0x232   :  { %v435_v50 = vmul.f32 0.5, %v420_v46  ;;  %v423_v51 = vadd.f32 %v422_v49, %v347_v48  ;;  %v868_v52 = vpop.f32.mrb[7].mxu1  ;;  %v562_v48 = vpop.permute.xlu0 %561 }
 0x233   :  { %v612_v52 = vpop.permute.xlu1 %611 }
 0x234   :  { %949 = vtanh.f32 %v435_v50  ;;  %v436_v53 = vmul.f32 0.5, %v423_v51 }
 0x236   :  { %v946_v54 = vpop.eup %945  ;;  %951 = vtanh.f32 %v436_v53  ;;  %v596_v53 = vsub.s32 5, %v539_v32 }
 0x237   :  { %v443_v56 = vadd.f32 1.0, %v946_v54  ;;  %v427_v57 = vpop.f32.mrb[8].mxu1  ;;  %v606_v54 = vsub.s32 6, %v539_v32 }
 0x238   :  { %v948_v58 = vpop.eup %947  ;;  %v428_v59 = vadd.f32 %v427_v57, %v352_v55  ;;  %v871_v60 = vpop.f32.mrb[9].mxu1 }
 0x239   :  { %v444_v61 = vadd.f32 1.0, %v948_v58  ;;  %v430_v62 = vpop.f32.mrb[10].mxu1  ;;  %v448_v1 = vmul.f32 0.5, %v443_v56 }
 0x23a   :  { %v437_v63 = vmul.f32 0.5, %v428_v59  ;;  %v872_v0 = vpop.f32.mrb[11].mxu1 }
 0x23b   :  { %v449_v2 = vmul.f32 0.5, %v444_v61  ;;  %v616_v61 = vsub.s32 7, %v539_v32 }
 0x23c   :  { %953 = vtanh.f32 %v437_v63  ;;  %v592_v63 = vpop.permute.xlu0 %591 }
 0x23d   :  { %v453_v4 = vpack.c.bf16 %v449_v2, %v448_v1 }
 0x23e   :  { %v950_v5 = vpop.eup %949 }
 0x23f   :  { %v445_v6 = vadd.f32 1.0, %v950_v5  ;;  %874 = vmatpush3.bf16.msra.mxu1 %v453_v4  ;;  %v632_v4 = vpop.permute.xlu1 %631 }
 0x240   :  { %v952_v8 = vpop.eup %951  ;;  %875 = vmatprep.subr.bf16.mxu1 %v985_v3 }
 0x241   :  { %v446_v9 = vadd.f32 1.0, %v952_v8  ;;  %v450_v10 = vmul.f32 0.5, %v445_v6 }
 0x243   :  { %v451_v11 = vmul.f32 0.5, %v446_v9 }
 0x245   :  { %v454_v12 = vpack.c.bf16 %v451_v11, %v450_v10 }
 0x246   :  { %v954_v13 = vpop.eup %953 }
 0x247   :  { %v447_v14 = vadd.f32 1.0, %v954_v13  ;;  %876 = vmatpush3.bf16.msra.mxu1 %v454_v12  ;;  %v648_v13 = vpop.permute.xlu1 %647 }
 0x248   :  { %877 = vmatprep.subr.bf16.mxu1 %v985_v3 }
 0x249   :  { %v452_v15 = vmul.f32 0.5, %v447_v14  ;;  %v622_v14 = vpop.permute.xlu0 %621 }
 0x24b   :  { %v455_v16 = vpack.c.bf16 %v452_v15, %v452_v15 }
 0x24d   :  { %v481_v17 = vsel %vm479_vm3, %v455_v16, 0 }
 0x24e   :  { %878 = vmatpush3.bf16.msra.mxu1 %v481_v17 }
 0x251   :  { %880 = vmatmul.mubr.msk.bf16.vlgmr.msra.gmra.mrb[12].mxu1 %vm475_vm4, %v924_v18 }
 0x324   :  { %v517_v21 = vpop.f32.mrb[12].mxu1 }
 0x325   :  { %v518_v23 = vadd.f32 %v517_v21, %v463_v19  ;;  %v881_v24 = vpop.f32.mrb[13].mxu1 }
 0x326   :  { %v520_v25 = vpop.f32.mrb[14].mxu1 }
 0x327   :  { %v524_v26 = vmul.f32 0.5, %v518_v23  ;;  %v882_v3 = vpop.f32.mrb[15].mxu1  ;;  %v521_v28 = vadd.f32 %v520_v25, %v468_v27 }
 0x329   :  { %955 = vtanh.f32 %v524_v26  ;;  %v525_v31 = vmul.f32 0.5, %v521_v28  ;;  %v668_v26 = vpop.permute.xlu0 %667 }
 0x32a   :  { %v673_v30 = vrot.slane %v668_v26, %v1258_v36 }
 0x32b   :  { %957 = vtanh.f32 %v525_v31 }
 0x32d   :  { %v694_v28 = vpop.permute.xlu0 %693 }
 0x333   :  { %v956_v34 = vpop.eup %955 }
 0x334   :  { %v528_v35 = vadd.f32 1.0, %v956_v34 }
 0x335   :  { %v958_v47 = vpop.eup %957 }
 0x336   :  { %v530_v44 = vmul.f32 0.5, %v528_v35  ;;  %v529_v55 = vadd.f32 1.0, %v958_v47  ;;  %v699_v35 = vrot.slane %v694_v28, %v1258_v36 }
 0x338   :  { %v541_v7 = vrot.slane %v530_v44, %v1258_v36  ;;  %v557_v41 = vrot.slane %v530_v44, %v556_v37  ;;  %v567_v46 = vrot.slane %v530_v44, %v566_v39  ;;  %v577_v51 = vrot.slane %v530_v44, %v576_v42 }
 0x339   :  { %v587_v57 = vrot.slane %v530_v44, %v586_v45  ;;  %v597_v62 = vrot.slane %v530_v44, %v596_v53  ;;  %v607_v1 = vrot.slane %v530_v44, %v606_v54  ;;  %v531_v5 = vmul.f32 0.5, %v529_v55 }
 0x33a   :  { %v542_v43 = vmul.f32 %v541_v7, %v536_v20  ;;  %v558_v50 = vmul.f32 %v557_v41, %v552_v22  ;;  %v568_v58 = vmul.f32 %v567_v46, %v562_v48  ;;  %v578_v59 = vmul.f32 %v577_v51, %v572_v29  ;;  %v659_v22 = vpop.permute.xlu1 %658  ;;  %v733_v7 = vpop.permute.xlu0 %732 }
 0x33b   :  { %v588_v0 = vmul.f32 %v587_v57, %v582_v33  ;;  %v617_v6 = vrot.slane %v530_v44, %v616_v61  ;;  %v598_v9 = vmul.f32 %v597_v62, %v592_v63  ;;  %v608_v10 = vmul.f32 %v607_v1, %v602_v38 }
 0x33c   :  { %v549_v49 = vadd.f32 %v547_v40, %v542_v43  ;;  %v627_v12 = vrot.slane %v531_v5, %v1258_v36  ;;  %v637_v17 = vrot.slane %v531_v5, %v556_v37  ;;  %v653_v33 = vrot.slane %v648_v13, %v1258_v36 }
 0x33d   :  { %v618_v15 = vmul.f32 %v617_v6, %v612_v52  ;;  %v664_v37 = vrot.slane %v659_v22, %v1258_v36 }
 0x33e   :  { %v559_v56 = vadd.f32 %v558_v50, %v549_v49  ;;  %v628_v19 = vmul.f32 %v627_v12, %v622_v14  ;;  %v638_v20 = vmul.f32 %v637_v17, %v632_v4  ;;  %v681_v25 = vpop.permute.xlu1 %680  ;;  %v738_v50 = vrot.slane %v733_v7, %v1258_v36 }
 0x33f   :  { %v686_v34 = vrot.slane %v681_v25, %v1258_v36 }
 0x340   :  { %v569_v60 = vadd.f32 %v568_v58, %v559_v56 }
 0x342   :  { %v579_v2 = vadd.f32 %v578_v59, %v569_v60  ;;  %v707_v3 = vpop.permute.xlu1 %706 }
 0x343   :  { %v712_v39 = vrot.slane %v707_v3, %v1258_v36 }
 0x344   :  { %v589_v8 = vadd.f32 %v588_v0, %v579_v2 }
 0x346   :  { %v599_v11 = vadd.f32 %v598_v9, %v589_v8  ;;  %v720_v31 = vpop.permute.xlu1 %719 }
 0x347   :  { %v725_v43 = vrot.slane %v720_v31, %v1258_v36 }
 0x348   :  { %v609_v16 = vadd.f32 %v608_v10, %v599_v11 }
 0x34a   :  { %v619_v18 = vadd.f32 %v618_v15, %v609_v16  ;;  %v746_v46 = vpop.permute.xlu1 %745 }
 0x34b   :  { %v751_v54 = vrot.slane %v746_v46, %v1258_v36 }
 0x34c   :  { %v629_v21 = vadd.f32 %v628_v19, %v619_v18 }
 0x34e   :  { %v639_v23 = vadd.f32 %v638_v20, %v629_v21 }
 0x350   :  { %v640_v24 = vmul.f32 0.5, %v639_v23 }
 0x352   :  { %959 = vtanh.f32 %v640_v24 }
 0x35c   :  { %v960_v27 = vpop.eup %959 }
 0x35d   :  { %v642_v29 = vadd.f32 1.0, %v960_v27 }
 0x35f   :  { %v643_v32 = vmul.f32 0.5, %v642_v29 }
 0x361   :  { %v654_v44 = vmul.f32 %v653_v33, %v643_v32  ;;  %v687_v38 = vmul.f32 %v686_v34, %v643_v32  ;;  %v674_v40 = vmul.f32 %v673_v30, %v643_v32  ;;  %v700_v45 = vmul.f32 %v699_v35, %v643_v32 }
 0x362   :  { %v713_v48 = vmul.f32 %v712_v39, %v643_v32  ;;  %v726_v51 = vmul.f32 %v725_v43, %v643_v32  ;;  %v739_v57 = vmul.f32 %v738_v50, %v643_v32  ;;  %v752_v60 = vmul.f32 %v751_v54, %v643_v32 }
 0x363   :  { %v665_v41 = vadd.f32 %v664_v37, %v654_v44  ;;  %v676_v42 = vrot.slane %v674_v40, 1  ;;  %v689_v47 = vrot.slane %v687_v38, 2  ;;  %v702_v53 = vrot.slane %v700_v45, 3 }
 0x364   :  { %v715_v55 = vrot.slane %v713_v48, 4  ;;  %v728_v58 = vrot.slane %v726_v51, 5  ;;  %v741_v61 = vrot.slane %v739_v57, 6  ;;  %v754_v63 = vrot.slane %v752_v60, 7 }
 0x365   :  { %v678_v49 = vadd.f32 %v676_v42, %v665_v41 }
 0x367   :  { %v691_v52 = vadd.f32 %v689_v47, %v678_v49 }
 0x369   :  { %v704_v56 = vadd.f32 %v702_v53, %v691_v52 }
 0x36b   :  { %v717_v59 = vadd.f32 %v715_v55, %v704_v56 }
 0x36d   :  { %v730_v62 = vadd.f32 %v728_v58, %v717_v59 }
 0x36f   :  { %v743_v0 = vadd.f32 %v741_v61, %v730_v62 }
 0x371   :  { %v756_v1 = vadd.f32 %v754_v63, %v743_v0 }
 0x373   :  { %757 = vst [vmem:[#allocation3] sm:$0x1] %v756_v1 }
 0x374   :  { %972 = shalt.err (!%p969_p4)
}
 0x375   :  { %s973_s7 = scalar_lea.hbm %s1294_s11, 16 }
 0x376   :  { %p974_p5 = scmp.ne.s32.totalorder %s1294_s11, %s973_s7  ;;  %p977_p6 = scmp.lt.u32.totalorder %s973_s7, %s1294_s11 }
 0x378   :  { %p979_p7 = pnand %p977_p6, %p974_p5 }
 0x37a   :  { %982 = shalt.err (!%p979_p7)
}
 0x37b   :  { %767 = dma.vmem_to_hbm [thread:$0]  %s765_s18, 16, %s1294_s11, [#allocation4]  }
 0x37c   :  { %983 = dma.done.wait [#allocation4], 16  }
 0x37d   :  { %984 = vsyncadd [#allocation4], 4294967280 }
 0x37e   :  { %771 = vsyncpa [#allocation4], 1 }

</bundles_post_ra>
